<compile_context>
chip_gen: v6e
topology: v6e:2x2x1
jax: 0.10.0
libtpu: 0.0.40
codegen_flags: <defaults>
</compile_context>

<pallas_src>
import math

import jax
import jax.numpy as jnp
from jax.experimental import pallas as pl
from jax.experimental.pallas import tpu as pltpu

ALPHA = 0.25
GAMMA = 2.0            # statically 2 -> explicit square in the kernel
LANES = 128            # lane width of the flattened slab
TM_MAX = 8192          # rows per grid step: 8192*128*4 B = 4 MiB per input block
VMEM_LIMIT = 32 << 20  # 2 inputs x 2 buffers x 4 MiB = 16 MiB live; safe on v5e/v6e/v7x
X_PAD = -1.0e4         # padding logit: with target 0 this yields exactly 0 loss


def _make_kernel(inner, tm, rows_valid, acc_rows, need_mask):
    """Build the kernel with all tiling parameters closed over statically."""

    def kernel(x_ref, t_ref, o_ref):
        c = pl.program_id(0)
        i = pl.program_id(1)

        @pl.when(i == 0)
        def _():
            o_ref[...] = jnp.zeros_like(o_ref)

        x = x_ref[...].astype(jnp.float32)
        t = t_ref[...].astype(jnp.float32)

        # Numerically-stable BCE with logits (matches PyTorch):
        #   bce = max(x, 0) - x*t + log1p(exp(-|x|))
        bce = jnp.maximum(x, 0.0) - x * t + jnp.log1p(jnp.exp(-jnp.abs(x)))
        pt = jnp.exp(-bce)
        q = 1.0 - pt
        f_loss = (q * q) * bce          # gamma == 2 -> square; alpha folded outside

        if need_mask:
            # Mask the ragged tail / fully-OOB redundant blocks at row
            # granularity, AFTER computing f_loss (select discards garbage).
            row0 = (c * inner + i) * tm
            rid = row0 + jax.lax.broadcasted_iota(jnp.int32, (tm, LANES), 0)
            f_loss = jnp.where(rid < rows_valid, f_loss, 0.0)

        # Reduce the (tm,128) tile to an (acc_rows,128) partial with pure VPU
        # adds and accumulate into the resident output block.  The single
        # cross-lane reduction happens once, in the wrapper.
        o_ref[...] += f_loss.reshape(-1, acc_rows, LANES).sum(axis=0)

    return kernel


def focal_loss(inputs: jax.Array, targets: jax.Array) -> jax.Array:
    """Focal loss (mean reduction) over arbitrarily-shaped logits/targets."""
    assert inputs.shape == targets.shape
    n_total = int(math.prod(inputs.shape))

    x = inputs.reshape(-1)
    t = targets.reshape(-1)

    # ---- lane alignment (metadata-only reshape in the common aligned case) ----
    n_pad = (-n_total) % LANES
    if n_pad:
        # TODO(synk): avoid this full-array copy by handling the <128-element
        # lane tail in-kernel; only taken when numel % 128 != 0.
        x = jnp.pad(x, (0, n_pad), constant_values=X_PAD)
        t = jnp.pad(t, (0, n_pad), constant_values=0.0)
    rows_data = (n_total + n_pad) // LANES
    x2 = x.reshape(rows_data, LANES)
    t2 = t.reshape(rows_data, LANES)

    # ---- tiling (all static Python) ----
    tm = min(TM_MAX, ((rows_data + 7) // 8) * 8)       # multiple of 8 sublanes
    n_blocks = -(-rows_data // tm)                     # ceil
    nc = 2 if n_blocks >= 2 else 1                     # megacore split (v7x)
    inner = -(-n_blocks // nc)
    acc_rows = 32 if tm % 32 == 0 else 8               # wider acc when possible
    need_mask = (rows_data % tm != 0) or (nc * inner != n_blocks)

    if nc * inner == n_blocks:
        in_map = lambda c, i: (c * inner + i, 0)
    else:
        # Redundant trailing steps re-read (cheaply) the last block; their
        # contribution is fully masked out in-kernel.
        last_blk = n_blocks - 1
        in_map = lambda c, i: (jnp.minimum(c * inner + i, last_blk), 0)

    in_spec = pl.BlockSpec((tm, LANES), in_map)
    out_spec = pl.BlockSpec((acc_rows, LANES), lambda c, i: (c, 0))

    n_proc = nc * inner * tm * LANES
    cost = pl.CostEstimate(
        flops=12 * n_proc,
        transcendentals=3 * n_proc,
        bytes_accessed=(x2.size * x2.dtype.itemsize
                        + t2.size * t2.dtype.itemsize
                        + nc * acc_rows * LANES * 4),
    )

    kernel = _make_kernel(inner, tm, rows_data, acc_rows, need_mask)

    partials = pl.pallas_call(
        kernel,
        out_shape=jax.ShapeDtypeStruct((nc * acc_rows, LANES), jnp.float32),
        grid_spec=pltpu.PrefetchScalarGridSpec(
            num_scalar_prefetch=0,
            grid=(nc, inner),
            in_specs=[in_spec, in_spec],
            out_specs=out_spec,
        ),
        compiler_params=pltpu.CompilerParams(
            dimension_semantics=("parallel", "arbitrary"),
            vmem_limit_bytes=VMEM_LIMIT,
        ),
        cost_estimate=cost,
    )(x2, t2)

    # Single cross-lane reduction + alpha/mean fold, once, outside the kernel.
    return jnp.sum(partials) * jnp.float32(ALPHA / n_total)


def focal_loss_ref(inputs, targets):
    """Pure-JAX reference for verification."""
    x = inputs.astype(jnp.float32)
    t = targets.astype(jnp.float32)
    bce = jnp.maximum(x, 0.0) - x * t + jnp.log1p(jnp.exp(-jnp.abs(x)))
    pt = jnp.exp(-bce)
    return jnp.mean(ALPHA * (1.0 - pt) ** GAMMA * bce)


if __name__ == "__main__":
    key = jax.random.PRNGKey(0)
    k1, k2 = jax.random.split(key)

    # NCHW logits and binary float targets, as in typical FocalLoss usage.
    x = jax.random.normal(k1, (2, 4, 16, 16), dtype=jnp.float32)
    targets = (jax.random.uniform(k2, (2, 4, 16, 16)) > 0.5).astype(jnp.float32)

    out = focal_loss(x, targets)
    jax.block_until_ready(out)

    ref = focal_loss_ref(x, targets)
    assert jnp.allclose(out, ref, atol=1e-6, rtol=1e-5), (out, ref)

    print("KERNEL_OK")
</pallas_src>

<mosaic_0001>
module attributes {stable_mosaic.version = 11 : i64} {
  func.func @kernel(%arg0: i32, %arg1: i32, %arg2: memref<16x128xf32, #tpu.memory_space<vmem>>, %arg3: memref<16x128xf32, #tpu.memory_space<vmem>>, %arg4: memref<8x128xf32, #tpu.memory_space<vmem>>) attributes {dimension_semantics = [#tpu.dimension_semantics<parallel>, #tpu.dimension_semantics<arbitrary>], iteration_bounds = array<i64: 1, 1>, scalar_prefetch = 0 : i64, scratch_operands = 0 : i64, tpu.core_type = #tpu.core_type<tc>, window_params = [{transform_indices = @transform_0, window_bounds = array<i64: 16, 128>}, {transform_indices = @transform_1, window_bounds = array<i64: 16, 128>}, {transform_indices = @transform_2, window_bounds = array<i64: 8, 128>}]} {
    %c0_i32 = arith.constant 0 : i32
    %0 = arith.cmpi eq, %arg1, %c0_i32 : i32
    %1 = arith.extui %0 : i1 to i32
    %c0_i32_0 = arith.constant 0 : i32
    %2 = arith.cmpi ne, %1, %c0_i32_0 : i32
    scf.if %2 {
      %cst_12 = arith.constant 0.000000e+00 : f32
      %27 = vector.broadcast %cst_12 : f32 to vector<8x128xf32>
      %c0_13 = arith.constant 0 : index
      %c0_14 = arith.constant 0 : index
      %28 = vector.load %arg4[%c0_13, %c0_14] : memref<8x128xf32, #tpu.memory_space<vmem>>, vector<8x128xf32>
      tpu.vector_store %arg4[%c0_13, %c0_14], %27 {strides = array<i32>} : memref<8x128xf32, #tpu.memory_space<vmem>>, vector<8x128xf32>,
    } else {
    }
    %c0 = arith.constant 0 : index
    %c0_1 = arith.constant 0 : index
    %3 = vector.load %arg2[%c0, %c0_1] : memref<16x128xf32, #tpu.memory_space<vmem>>, vector<16x128xf32>
    %c0_2 = arith.constant 0 : index
    %c0_3 = arith.constant 0 : index
    %4 = vector.load %arg3[%c0_2, %c0_3] : memref<16x128xf32, #tpu.memory_space<vmem>>, vector<16x128xf32>
    %cst = arith.constant 0.000000e+00 : f32
    %5 = vector.broadcast %cst : f32 to vector<16x128xf32>
    %6 = arith.maximumf %3, %5 : vector<16x128xf32>
    %7 = arith.mulf %3, %4 : vector<16x128xf32>
    %8 = arith.subf %6, %7 : vector<16x128xf32>
    %9 = math.absf %3 : vector<16x128xf32>
    %cst_4 = arith.constant 0.000000e+00 : f32
    %10 = vector.broadcast %cst_4 : f32 to vector<16x128xf32>
    %11 = arith.subf %10, %9 : vector<16x128xf32>
    %12 = math.exp %11 : vector<16x128xf32>
    %13 = math.log1p %12 : vector<16x128xf32>
    %14 = arith.addf %8, %13 : vector<16x128xf32>
    %cst_5 = arith.constant 0.000000e+00 : f32
    %15 = vector.broadcast %cst_5 : f32 to vector<16x128xf32>
    %16 = arith.subf %15, %14 : vector<16x128xf32>
    %17 = math.exp %16 : vector<16x128xf32>
    %cst_6 = arith.constant 1.000000e+00 : f32
    %18 = vector.broadcast %cst_6 : f32 to vector<16x128xf32>
    %19 = arith.subf %18, %17 : vector<16x128xf32>
    %20 = arith.mulf %19, %19 : vector<16x128xf32>
    %21 = arith.mulf %20, %14 : vector<16x128xf32>
    %c0_7 = arith.constant 0 : index
    %c0_8 = arith.constant 0 : index
    %22 = vector.load %arg4[%c0_7, %c0_8] : memref<8x128xf32, #tpu.memory_space<vmem>>, vector<8x128xf32>
    %23 = vector.shape_cast %21 : vector<16x128xf32> to vector<2x8x128xf32>
    %cst_9 = arith.constant dense<0.000000e+00> : vector<8x128xf32>
    %24 = vector.multi_reduction <add>, %23, %cst_9 [0] : vector<2x8x128xf32> to vector<8x128xf32>
    %25 = arith.addf %22, %24 : vector<8x128xf32>
    %c0_10 = arith.constant 0 : index
    %c0_11 = arith.constant 0 : index
    %26 = vector.load %arg4[%c0_10, %c0_11] : memref<8x128xf32, #tpu.memory_space<vmem>>, vector<8x128xf32>
    tpu.vector_store %arg4[%c0_10, %c0_11], %25 {strides = array<i32>} : memref<8x128xf32, #tpu.memory_space<vmem>>, vector<8x128xf32>,
    return
  }
  func.func @transform_0(%arg0: i32, %arg1: i32) -> (i32, i32) {
    %c1_i32 = arith.constant 1 : i32
    %0 = arith.muli %arg0, %c1_i32 : i32
    %1 = arith.addi %0, %arg1 : i32
    %c0_i32 = arith.constant 0 : i32
    %c0_i32_0 = arith.constant 0 : i32
    return %1, %c0_i32 : i32, i32
  }
  func.func @transform_1(%arg0: i32, %arg1: i32) -> (i32, i32) {
    %c1_i32 = arith.constant 1 : i32
    %0 = arith.muli %arg0, %c1_i32 : i32
    %1 = arith.addi %0, %arg1 : i32
    %c0_i32 = arith.constant 0 : i32
    %c0_i32_0 = arith.constant 0 : i32
    return %1, %c0_i32 : i32, i32
  }
  func.func @transform_2(%arg0: i32, %arg1: i32) -> (i32, i32) {
    %c0_i32 = arith.constant 0 : i32
    %c0_i32_0 = arith.constant 0 : i32
    return %arg0, %c0_i32 : i32, i32
  }
}

</mosaic_0001>

<bundles_post_ra>
// kernel: tpu_custom_call.1
= control target key start
LH: loop header
LB: loop body
LE: loop exit
PB: predicated region body
PF: predicated region fallthrough
CT: control target
= control target key end

     0   :  { %7 = vsyncpa [#allocation3], 0  ;;  %s240_s0 = inlined_call_operand.hbm [shape: f32[16,128], index: 0, kind: input, shape index: {}]   ;;  %s241_s1 = inlined_call_operand.hbm [shape: f32[16,128], index: 1, kind: input, shape index: {}]   ;;  %s242_s2 = inlined_call_operand.hbm [shape: f32[8,128], index: 2, kind: output, shape index: {}]  }
   0x1   :  { %8 = vsyncpa [#allocation6], 0 }
   0x2   :  { %9 = vsyncpa [#allocation4], 0  ;;  %s211_s9 = smov [#allocation2]  }
   0x3   :  { %s19_s10 = sshll.u32 %s211_s9, 4  ;;  %s20_s10 = int_to_ptr.vmem [resolvable:$true] %s19_s10 }
   0x4   :  { %s153_s11 = scalar_lea.vmem %s20_s10, 256  ;;  %p158_p1 = scmp.lt.s32.totalorder %s20_s10, %s20_s10 }
   0x5   :  { %p154_p0 = scmp.ne.s32.totalorder %s20_s10, %s153_s11  ;;  %p159_p2 = scmp.lt.s32.totalorder %s153_s11, %s153_s11 }
   0x7   :  { %p160_p3 = por %p159_p2, %p158_p1 }
   0x9   :  { %p161_p4 = pnand %p160_p3, %p154_p0 }
   0xb   :  { %164 = shalt.err (!%p161_p4)
}
   0xc   :  { %s212_s12 = smov 128   ;;  %s213_s13 = smov 8  }
   0xd   :  { %25 = dma.hbm_to_vmem [thread:$0]  %s240_s0, 256, %s20_s10, [#allocation3], %s212_s12, %s212_s12, %s213_s13  }
   0xe   :  { %s214_s16 = smov [#allocation5]  }
   0xf   :  { %s35_s17 = sshll.u32 %s214_s16, 4  ;;  %s36_s17 = int_to_ptr.vmem [resolvable:$true] %s35_s17 }
  0x10   :  { %s173_s18 = scalar_lea.vmem %s36_s17, 256  ;;  %p178_p6 = scmp.lt.s32.totalorder %s36_s17, %s36_s17 }
  0x11   :  { %p174_p5 = scmp.ne.s32.totalorder %s36_s17, %s173_s18  ;;  %p179_p7 = scmp.lt.s32.totalorder %s173_s18, %s173_s18 }
  0x13   :  { %p180_p8 = por %p179_p7, %p178_p6 }
  0x15   :  { %p181_p9 = pnand %p180_p8, %p174_p5 }
  0x17   :  { %184 = shalt.err (!%p181_p9)
}
  0x18   :  { %41 = dma.hbm_to_vmem [thread:$0]  %s241_s1, 256, %s36_s17, [#allocation6], %s212_s12, %s212_s12, %s213_s13  }
  0x19   :  { %205 = dma.done.wait [#allocation3], 256  }
  0x1a   :  { %206 = vsyncadd [#allocation3], 4294967040 }
  0x1b   :  { %207 = dma.done.wait [#allocation6], 256  }
  0x1c   :  { %208 = vsyncadd [#allocation6], 4294967040  ;;  %v57_v0 = vld [vmem:[#allocation2] sm:$0xff]  ;;  %v58_v1 = vld [vmem:[#allocation2 + $0x8] sm:$0xff]  ;;  %s215_s0 = smov [#allocation7]  }
  0x1d   :  { %v67_v2 = vand.u32 2147483647, %v57_v0  ;;  %v68_v3 = vand.u32 2147483647, %v58_v1  ;;  %v59_v14 = vld [vmem:[#allocation5] sm:$0xff]  ;;  %v60_v15 = vld [vmem:[#allocation5 + $0x8] sm:$0xff] }
  0x1e   :  { %v61_v17 = vmax.f32 %v57_v0, 0.0  ;;  %v63_v18 = vmul.f32 %v59_v14, %v57_v0  ;;  %v62_v21 = vmax.f32 %v58_v1, 0.0  ;;  %v64_v22 = vmul.f32 %v60_v15, %v58_v1  ;;  %s117_s1 = sshll.u32 %s215_s0, 4  ;;  %s118_s1 = int_to_ptr.vmem [resolvable:$true] %s117_s1 }
  0x1f   :  { %v69_v4 = vsub.f32 0.0, %v67_v2  ;;  %v70_v5 = vsub.f32 0.0, %v68_v3  ;;  %s185_s21 = scalar_lea.vmem %s118_s1, 128  ;;  %p190_p11 = scmp.lt.s32.totalorder %s118_s1, %s118_s1 }
  0x20   :  { %v65_v26 = vsub.f32 %v61_v17, %v63_v18  ;;  %v66_v29 = vsub.f32 %v62_v21, %v64_v22  ;;  %p186_p10 = scmp.ne.s32.totalorder %s118_s1, %s185_s21  ;;  %p191_p12 = scmp.lt.s32.totalorder %s185_s21, %s185_s21 }
  0x21   :  { %v71_v6 = vmul.f32 1.442695, %v69_v4  ;;  %v73_v7 = vmul.f32 1.442695, %v70_v5 }
  0x22   :  { %p192_p13 = por %p191_p12, %p190_p11 }
  0x23   :  { %133 = vpow2.f32 %v71_v6 }
  0x24   :  { %135 = vpow2.f32 %v73_v7  ;;  %p193_p0 = pnand %p192_p13, %p186_p10 }
  0x30   :  { %v134_v8 = vpop.eup %133 }
  0x31   :  { %v136_v9 = vpop.eup %135  ;;  %v75_v10 = vadd.f32 1.0, %v134_v8  ;;  %v78_v12 = vmul.f32 -0.5, %v134_v8  ;;  %v81_v19 = vand.u32 2147483647, %v134_v8 }
  0x32   :  { %v84_v11 = vadd.f32 1.0, %v136_v9  ;;  %v87_v13 = vmul.f32 -0.5, %v136_v9  ;;  %v90_v23 = vand.u32 2147483647, %v136_v9 }
  0x33   :  { %137 = vlog2.f32 %v75_v10  ;;  %v79_v16 = vadd.f32 1.0, %v78_v12  ;;  %vm82_vm0 = vcmp.lt.f32.partialorder %v81_v19, 0.0004427343 }
  0x34   :  { %139 = vlog2.f32 %v84_v11  ;;  %v88_v20 = vadd.f32 1.0, %v87_v13  ;;  %vm91_vm1 = vcmp.lt.f32.partialorder %v90_v23, 0.0004427343 }
  0x35   :  { %v80_v24 = vmul.f32 %v134_v8, %v79_v16 }
  0x36   :  { %v89_v27 = vmul.f32 %v136_v9, %v88_v20 }
  0x40   :  { %v138_v25 = vpop.eup %137 }
  0x41   :  { %v140_v28 = vpop.eup %139  ;;  %v77_v30 = vmul.f32 0.6931472, %v138_v25 }
  0x42   :  { %v86_v31 = vmul.f32 0.6931472, %v140_v28 }
  0x43   :  { %v83_v32 = vsel %vm82_vm0, %v80_v24, %v77_v30 }
  0x44   :  { %v92_v33 = vsel %vm91_vm1, %v89_v27, %v86_v31  ;;  %v93_v34 = vadd.f32 %v83_v32, %v65_v26 }
  0x45   :  { %v94_v35 = vadd.f32 %v92_v33, %v66_v29 }
  0x46   :  { %v95_v36 = vsub.f32 0.0, %v93_v34 }
  0x47   :  { %v96_v37 = vsub.f32 0.0, %v94_v35 }
  0x48   :  { %v97_v38 = vmul.f32 1.442695, %v95_v36 }
  0x49   :  { %v99_v39 = vmul.f32 1.442695, %v96_v37 }
  0x4a   :  { %141 = vpow2.f32 %v97_v38 }
  0x4b   :  { %143 = vpow2.f32 %v99_v39 }
  0x57   :  { %v142_v40 = vpop.eup %141 }
  0x58   :  { %v144_v41 = vpop.eup %143  ;;  %v101_v42 = vsub.f32 1.0, %v142_v40 }
  0x59   :  { %v102_v43 = vsub.f32 1.0, %v144_v41 }
  0x5a   :  { %v103_v44 = vmul.f32 %v101_v42, %v101_v42 }
  0x5b   :  { %v104_v45 = vmul.f32 %v102_v43, %v102_v43 }
  0x5c   :  { %v105_v46 = vmul.f32 %v103_v44, %v93_v34 }
  0x5d   :  { %v106_v47 = vmul.f32 %v104_v45, %v94_v35 }
  0x5f   :  { %v108_v48 = vadd.f32 %v106_v47, %v105_v46 }
  0x61   :  { %110 = vst [vmem:[#allocation7] sm:$0xff] %v108_v48 }
  0x62   :  { %196 = shalt.err (!%p193_p0)
}
  0x63   :  { %120 = dma.vmem_to_hbm [thread:$0]  %s118_s1, 128, %s242_s2, [#allocation4]  }
  0x64   :  { %209 = dma.done.wait [#allocation4], 128  }
  0x65   :  { %210 = vsyncadd [#allocation4], 4294967168 }
  0x66   :  { %124 = vsyncpa [#allocation3], 1 }
  0x67   :  { %125 = vsyncpa [#allocation6], 1 }
  0x68   :  { %126 = vsyncpa [#allocation4], 1 }

</bundles_post_ra>
